<compile_context>
chip_gen: v7x
topology: tpu7x:2x2x1
jax: 0.10.0
libtpu: 0.0.40
codegen_flags: <defaults>
</compile_context>

<pallas_src>
import numpy as np
import jax
import jax.numpy as jnp
from jax import lax
from jax.experimental import pallas as pl
from jax.experimental.pallas import tpu as pltpu


def _round_up(x, m):
    return (x + m - 1) // m * m


def _make_kernel(depth, fold, C, lane_chunk, w_offs, b_offs):
    """Builds the kernel body.  fold=True => top degree bit lives on sublanes."""
    n_lead = depth - 1 if fold else depth

    def kernel(x_ref, w_ref, b_ref, out_ref):
        # Packed parameters are tiny (O(D*C) floats): load once per grid step.
        w_all = w_ref[...].astype(jnp.float32)          # (sum_W, SUB, 1)
        b_all = b_ref[...].astype(jnp.float32)          # (sum_B, SUB, 1)
        n_chunks = out_ref.shape[-1] // lane_chunk

        def body(j, carry):
            base = pl.multiple_of(j * lane_chunk, lane_chunk)
            # Register-resident lane chunk: keeps live vregs small, no spills.
            a = x_ref[:, :, pl.ds(base, lane_chunk)].astype(jnp.float32)
            for i in range(n_lead):
                L = a.shape[0]
                w = w_all[w_offs[i]:w_offs[i] + L]            # (L,    SUB, 1)
                b = b_all[b_offs[i]:b_offs[i] + L // 2]       # (L//2, SUB, 1)
                ar = a.reshape(L // 2, 2, a.shape[1], lane_chunk)
                wr = w.reshape(L // 2, 2, a.shape[1], 1)
                # Fused fuzzy-NAND pair collapse; leading-dim reshape/slice
                # are free (minor dims untouched), never materializes the
                # full-width "1 - a*w" temp.
                a = (1.0 - ar[:, 0] * wr[:, 0]) * (1.0 - ar[:, 1] * wr[:, 1]) + b
            if fold:
                # Final stage: the top degree bit is on the sublane axis
                # (sublanes [0:C] = bit 0, [C:2C] = bit 1).  Pair product is a
                # sublane-half combine (XLU slot), cheap relative to VALU.
                i = depth - 1
                w = w_all[w_offs[i]:w_offs[i] + 1]            # (1, 2C, 1)
                b = b_all[b_offs[i]:b_offs[i] + 1]            # (1, 2C, 1), dup'd halves
                t = 1.0 - a * w                               # (1, 2C, LC)
                a = t[:, :C, :] * t[:, C:, :] + b[:, :C, :]   # (1, C, LC)
            out_ref[:, pl.ds(base, lane_chunk)] = a[0].astype(out_ref.dtype)
            return carry

        lax.fori_loop(0, n_chunks, body, 0)

    return kernel


def _pack_params(weights, biases, C, D, depth, fold):
    """Pack per-stage weights/biases into two (sum_L, SUB, 1) arrays."""
    G = 2 if fold else 1
    SUB = G * C
    n_lead = depth - 1 if fold else depth
    w_slabs, b_slabs, w_offs, b_offs = [], [], [], []
    woff = boff = 0
    for i in range(n_lead):
        Lw = (D >> i) // G
        Lb = (D >> (i + 1)) // G
        # weights[i]: (C, D>>i) indexed (c, g*Lw + l) -> layout [l, g*C + c].
        w = jnp.transpose(weights[i].reshape(C, G, Lw), (2, 1, 0)).reshape(Lw, SUB, 1)
        b = jnp.transpose(biases[i].reshape(C, G, Lb), (2, 1, 0)).reshape(Lb, SUB, 1)
        w_slabs.append(w)
        b_slabs.append(b)
        w_offs.append(woff)
        b_offs.append(boff)
        woff += Lw
        boff += Lb
    if fold:
        # Last stage: weight (C, 2) -> sublane layout g*C + c; bias (C, 1)
        # duplicated across both sublane halves so packed arrays stay rectangular.
        w = jnp.transpose(weights[-1], (1, 0)).reshape(1, SUB, 1)
        b = jnp.tile(biases[-1][:, 0], (G,)).reshape(1, SUB, 1)
        w_slabs.append(w)
        b_slabs.append(b)
        w_offs.append(woff)
        b_offs.append(boff)
    return (jnp.concatenate(w_slabs, axis=0),
            jnp.concatenate(b_slabs, axis=0),
            tuple(w_offs), tuple(b_offs))


def recursive_linear_fuzzy_nand(x, weights, biases, *, batch_tile=8192,
                                input_dtype=None,
                                vmem_limit_bytes=32 * 1024 * 1024):
    """x: (B, C, D) float32.  weights[i]: (C, D >> i).  biases[i]: (C, D >> (i+1)).

    Returns (B, C) float32, matching RecursiveLinearFuzzyNAND.forward.

    batch_tile: lane-axis tile (multiple of 128).  Default 8192 keeps the
      double-buffered x block ~4 MiB and amortizes per-grid-step overhead;
      v5e/v6e can push to 16384 with vmem_limit_bytes=64 MiB, keep <= 8192
      and <= 48 MiB on v7x (64 MiB physical VMEM).
    input_dtype: optional HBM storage dtype for x (e.g. jnp.bfloat16 halves
      input DMA bytes on HBM-bound v5e/v6e); compute stays f32 in-kernel.
    """
    B, C, D = x.shape
    depth = int(np.log2(D))
    assert D == 2 ** depth
    assert batch_tile % 128 == 0
    if depth == 0:
        return x[..., 0]

    # Fold the top degree bit onto the sublane axis when it fits (C <= 4):
    # f32 vregs carry 8 sublanes, so (2, C) packing makes them fully dense.
    fold = (2 * C <= 8)
    G = 2 if fold else 1
    SUB = G * C
    Dg = D // G

    # Lane tile: cap so moderate batches still give >= 2 grid steps (lets
    # dimension_semantics=("parallel",) shard across v7x's 2 TensorCores).
    TB = min(batch_tile, max(128, _round_up(-(-B // 2), 128)))
    lane_chunk = 256 if TB % 256 == 0 else 128
    grid = (pl.cdiv(B, TB),)

    # Kernel layout (Dg, SUB, B): batch (big axis) on lanes, degree(+channel)
    # on sublanes, remaining degree bits leading.  Single transpose op; with
    # allow_input_fusion XLA may fold it into the pallas_call input stream.
    x_t = jnp.transpose(x.reshape(B, C, G, Dg), (3, 2, 1, 0)).reshape(Dg, SUB, B)
    if input_dtype is not None:
        x_t = x_t.astype(input_dtype)

    w_packed, b_packed, w_offs, b_offs = _pack_params(weights, biases, C, D, depth, fold)

    # No explicit batch padding: Pallas masks the ragged last block.  Padded
    # lanes of that block compute on stale/uninitialized buffer contents,
    # which is lane-isolated garbage discarded by the masked writeback.
    out = pl.pallas_call(
        _make_kernel(depth, fold, C, lane_chunk, w_offs, b_offs),
        grid=grid,
        in_specs=[
            pl.BlockSpec((Dg, SUB, TB), lambda i: (0, 0, i)),
            # Constant index_maps: params stay VMEM-resident across the grid.
            pl.BlockSpec(w_packed.shape, lambda i: (0, 0, 0)),
            pl.BlockSpec(b_packed.shape, lambda i: (0, 0, 0)),
        ],
        out_specs=pl.BlockSpec((C, TB), lambda i: (0, i)),
        out_shape=jax.ShapeDtypeStruct((C, B), jnp.float32),
        compiler_params=pltpu.CompilerParams(
            dimension_semantics=("parallel",),        # megacore on v7x, no-op elsewhere
            vmem_limit_bytes=vmem_limit_bytes,
            allow_input_fusion=[True, False, False],
        ),
        cost_estimate=pl.CostEstimate(
            flops=6 * B * C * (D - 1),
            transcendentals=0,
            bytes_accessed=int(x_t.size) * x_t.dtype.itemsize + 4 * B * C,
        ),
    )(x_t, w_packed, b_packed)

    return jnp.transpose(out, (1, 0))                  # (B, C)


def reference_forward(x, weights, biases):
    """Pure-JAX transcription of the PyTorch module (for validation)."""
    B, C, D = x.shape
    depth = int(np.log2(D))
    a = x.reshape((B, C) + (2,) * depth)
    for i in range(depth):
        w = weights[i].reshape((C,) + (2,) * (depth - i))
        b = biases[i].reshape((C,) + (2,) * (depth - i - 1))
        a = a * w
        a = 1.0 - a
        a = jnp.prod(a, axis=-1)
        a = a + b
    return a                                           # (B, C)


def _make_params(key, C, D, depth):
    keys = jax.random.split(key, 2 * depth)
    weights, biases = [], []
    for i in range(depth):
        W = D >> i
        w = jnp.full((C, W), 0.5, dtype=jnp.float32) \
            + 0.05 * jax.random.normal(keys[2 * i], (C, W), dtype=jnp.float32)
        b = 0.05 * jax.random.normal(keys[2 * i + 1], (C, W // 2), dtype=jnp.float32)
        weights.append(w)
        biases.append(b)
    return weights, biases


if __name__ == "__main__":
    # Module input_shape = (C, D) = (4, 16)  ->  degree 16, depth 4.
    B, C, D = 2, 4, 16
    depth = int(np.log2(D))

    key = jax.random.PRNGKey(0)
    kx, kx2, kx3, kp, kp3 = jax.random.split(key, 5)
    x = jax.random.uniform(kx, (B, C, D), dtype=jnp.float32)
    weights, biases = _make_params(kp, C, D, depth)

    fwd = jax.jit(recursive_linear_fuzzy_nand,
                  static_argnames=("batch_tile", "input_dtype", "vmem_limit_bytes"))

    # Check 1: module-sized input (single ragged grid step, folded sublane path).
    out = jax.block_until_ready(fwd(x, weights, biases))
    ref = reference_forward(x, weights, biases)
    assert out.shape == (B, C), out.shape
    assert jnp.allclose(out, ref, rtol=1e-5, atol=1e-6), (out, ref)

    # Check 2: larger ragged batch -> 2-step pipelined grid, 256-lane in-kernel chunks.
    B2 = 300
    x2 = jax.random.uniform(kx2, (B2, C, D), dtype=jnp.float32)
    out2 = jax.block_until_ready(fwd(x2, weights, biases))
    ref2 = reference_forward(x2, weights, biases)
    assert out2.shape == (B2, C), out2.shape
    assert jnp.allclose(out2, ref2, rtol=1e-5, atol=1e-6)

    # Check 2b: bf16 HBM storage for x (halves input DMA bytes); looser tolerance.
    out2b = jax.block_until_ready(fwd(x2, weights, biases, batch_tile=128,
                                      input_dtype=jnp.bfloat16))
    assert out2b.shape == (B2, C)
    assert jnp.allclose(out2b, ref2, rtol=3e-2, atol=3e-2)

    # Check 3: C > 4 exercises the non-folded (leading-axis-only) path.
    B3, C3, D3 = 130, 8, 8
    depth3 = int(np.log2(D3))
    x3 = jax.random.uniform(kx3, (B3, C3, D3), dtype=jnp.float32)
    w3, b3 = _make_params(kp3, C3, D3, depth3)
    out3 = jax.block_until_ready(fwd(x3, w3, b3))
    ref3 = reference_forward(x3, w3, b3)
    assert out3.shape == (B3, C3), out3.shape
    assert jnp.allclose(out3, ref3, rtol=1e-5, atol=1e-6)

    print("KERNEL_OK")
</pallas_src>

<mosaic_0001>
module attributes {stable_mosaic.version = 11 : i64} {
  func.func @kernel(%arg0: i32, %arg1: memref<8x8x128xf32, #tpu.memory_space<vmem>>, %arg2: memref<15x8x1xf32, #tpu.memory_space<vmem>>, %arg3: memref<8x8x1xf32, #tpu.memory_space<vmem>>, %arg4: memref<4x128xf32, #tpu.memory_space<vmem>>) attributes {dimension_semantics = [#tpu.dimension_semantics<parallel>], iteration_bounds = array<i64: 1>, scalar_prefetch = 0 : i64, scratch_operands = 0 : i64, tpu.core_type = #tpu.core_type<tc>, window_params = [{transform_indices = @transform_0, window_bounds = array<i64: 8, 8, 128>}, {pipeline_mode = #tpu.pipeline_mode<synchronous>, transform_indices = @transform_1, window_bounds = array<i64: 15, 8, 1>}, {pipeline_mode = #tpu.pipeline_mode<synchronous>, transform_indices = @transform_2, window_bounds = array<i64: 8, 8, 1>}, {transform_indices = @transform_3, window_bounds = array<i64: 4, 128>}]} {
    %c0 = arith.constant 0 : index
    %c0_0 = arith.constant 0 : index
    %c0_1 = arith.constant 0 : index
    %0 = vector.load %arg2[%c0, %c0_0, %c0_1] : memref<15x8x1xf32, #tpu.memory_space<vmem>>, vector<15x8x1xf32>
    %c0_2 = arith.constant 0 : index
    %c0_3 = arith.constant 0 : index
    %c0_4 = arith.constant 0 : index
    %1 = vector.load %arg3[%c0_2, %c0_3, %c0_4] : memref<8x8x1xf32, #tpu.memory_space<vmem>>, vector<8x8x1xf32>
    %c0_i32 = arith.constant 0 : i32
    %c128_i32 = arith.constant 128 : i32
    %2 = arith.muli %c0_i32, %c128_i32 : i32
    %3 = tpu.assume_multiple %2, 128 : i32
    %c0_5 = arith.constant 0 : index
    %c0_6 = arith.constant 0 : index
    %4 = arith.index_cast %3 : i32 to index
    %5 = vector.load %arg1[%c0_5, %c0_6, %4] : memref<8x8x128xf32, #tpu.memory_space<vmem>>, vector<8x8x128xf32>
    %6 = vector.extract_strided_slice %0 {offsets = [0, 0, 0], sizes = [8, 8, 1], strides = [1, 1, 1]} : vector<15x8x1xf32> to vector<8x8x1xf32>
    %7 = vector.extract_strided_slice %1 {offsets = [0, 0, 0], sizes = [4, 8, 1], strides = [1, 1, 1]} : vector<8x8x1xf32> to vector<4x8x1xf32>
    %8 = vector.shape_cast %5 : vector<8x8x128xf32> to vector<4x2x8x128xf32>
    %9 = vector.shape_cast %6 : vector<8x8x1xf32> to vector<4x2x8x1xf32>
    %10 = vector.extract_strided_slice %8 {offsets = [0, 0, 0, 0], sizes = [4, 1, 8, 128], strides = [1, 1, 1, 1]} : vector<4x2x8x128xf32> to vector<4x1x8x128xf32>
    %11 = vector.shape_cast %10 : vector<4x1x8x128xf32> to vector<4x8x128xf32>
    %12 = vector.extract_strided_slice %9 {offsets = [0, 0, 0, 0], sizes = [4, 1, 8, 1], strides = [1, 1, 1, 1]} : vector<4x2x8x1xf32> to vector<4x1x8x1xf32>
    %13 = vector.shape_cast %12 : vector<4x1x8x1xf32> to vector<4x8x1xf32>
    %14 = vector.broadcast %13 : vector<4x8x1xf32> to vector<4x8x128xf32>
    %15 = arith.mulf %11, %14 : vector<4x8x128xf32>
    %cst = arith.constant 1.000000e+00 : f32
    %16 = vector.broadcast %cst : f32 to vector<4x8x128xf32>
    %17 = arith.subf %16, %15 : vector<4x8x128xf32>
    %18 = vector.extract_strided_slice %8 {offsets = [0, 1, 0, 0], sizes = [4, 1, 8, 128], strides = [1, 1, 1, 1]} : vector<4x2x8x128xf32> to vector<4x1x8x128xf32>
    %19 = vector.shape_cast %18 : vector<4x1x8x128xf32> to vector<4x8x128xf32>
    %20 = vector.extract_strided_slice %9 {offsets = [0, 1, 0, 0], sizes = [4, 1, 8, 1], strides = [1, 1, 1, 1]} : vector<4x2x8x1xf32> to vector<4x1x8x1xf32>
    %21 = vector.shape_cast %20 : vector<4x1x8x1xf32> to vector<4x8x1xf32>
    %22 = vector.broadcast %21 : vector<4x8x1xf32> to vector<4x8x128xf32>
    %23 = arith.mulf %19, %22 : vector<4x8x128xf32>
    %cst_7 = arith.constant 1.000000e+00 : f32
    %24 = vector.broadcast %cst_7 : f32 to vector<4x8x128xf32>
    %25 = arith.subf %24, %23 : vector<4x8x128xf32>
    %26 = arith.mulf %17, %25 : vector<4x8x128xf32>
    %27 = vector.broadcast %7 : vector<4x8x1xf32> to vector<4x8x128xf32>
    %28 = arith.addf %26, %27 : vector<4x8x128xf32>
    %29 = vector.extract_strided_slice %0 {offsets = [8, 0, 0], sizes = [4, 8, 1], strides = [1, 1, 1]} : vector<15x8x1xf32> to vector<4x8x1xf32>
    %30 = vector.extract_strided_slice %1 {offsets = [4, 0, 0], sizes = [2, 8, 1], strides = [1, 1, 1]} : vector<8x8x1xf32> to vector<2x8x1xf32>
    %31 = vector.shape_cast %28 : vector<4x8x128xf32> to vector<2x2x8x128xf32>
    %32 = vector.shape_cast %29 : vector<4x8x1xf32> to vector<2x2x8x1xf32>
    %33 = vector.extract_strided_slice %31 {offsets = [0, 0, 0, 0], sizes = [2, 1, 8, 128], strides = [1, 1, 1, 1]} : vector<2x2x8x128xf32> to vector<2x1x8x128xf32>
    %34 = vector.shape_cast %33 : vector<2x1x8x128xf32> to vector<2x8x128xf32>
    %35 = vector.extract_strided_slice %32 {offsets = [0, 0, 0, 0], sizes = [2, 1, 8, 1], strides = [1, 1, 1, 1]} : vector<2x2x8x1xf32> to vector<2x1x8x1xf32>
    %36 = vector.shape_cast %35 : vector<2x1x8x1xf32> to vector<2x8x1xf32>
    %37 = vector.broadcast %36 : vector<2x8x1xf32> to vector<2x8x128xf32>
    %38 = arith.mulf %34, %37 : vector<2x8x128xf32>
    %cst_8 = arith.constant 1.000000e+00 : f32
    %39 = vector.broadcast %cst_8 : f32 to vector<2x8x128xf32>
    %40 = arith.subf %39, %38 : vector<2x8x128xf32>
    %41 = vector.extract_strided_slice %31 {offsets = [0, 1, 0, 0], sizes = [2, 1, 8, 128], strides = [1, 1, 1, 1]} : vector<2x2x8x128xf32> to vector<2x1x8x128xf32>
    %42 = vector.shape_cast %41 : vector<2x1x8x128xf32> to vector<2x8x128xf32>
    %43 = vector.extract_strided_slice %32 {offsets = [0, 1, 0, 0], sizes = [2, 1, 8, 1], strides = [1, 1, 1, 1]} : vector<2x2x8x1xf32> to vector<2x1x8x1xf32>
    %44 = vector.shape_cast %43 : vector<2x1x8x1xf32> to vector<2x8x1xf32>
    %45 = vector.broadcast %44 : vector<2x8x1xf32> to vector<2x8x128xf32>
    %46 = arith.mulf %42, %45 : vector<2x8x128xf32>
    %cst_9 = arith.constant 1.000000e+00 : f32
    %47 = vector.broadcast %cst_9 : f32 to vector<2x8x128xf32>
    %48 = arith.subf %47, %46 : vector<2x8x128xf32>
    %49 = arith.mulf %40, %48 : vector<2x8x128xf32>
    %50 = vector.broadcast %30 : vector<2x8x1xf32> to vector<2x8x128xf32>
    %51 = arith.addf %49, %50 : vector<2x8x128xf32>
    %52 = vector.extract_strided_slice %0 {offsets = [12, 0, 0], sizes = [2, 8, 1], strides = [1, 1, 1]} : vector<15x8x1xf32> to vector<2x8x1xf32>
    %53 = vector.extract_strided_slice %1 {offsets = [6, 0, 0], sizes = [1, 8, 1], strides = [1, 1, 1]} : vector<8x8x1xf32> to vector<1x8x1xf32>
    %54 = vector.shape_cast %51 : vector<2x8x128xf32> to vector<1x2x8x128xf32>
    %55 = vector.shape_cast %52 : vector<2x8x1xf32> to vector<1x2x8x1xf32>
    %56 = vector.extract_strided_slice %54 {offsets = [0, 0, 0, 0], sizes = [1, 1, 8, 128], strides = [1, 1, 1, 1]} : vector<1x2x8x128xf32> to vector<1x1x8x128xf32>
    %57 = vector.shape_cast %56 : vector<1x1x8x128xf32> to vector<1x8x128xf32>
    %58 = vector.extract_strided_slice %55 {offsets = [0, 0, 0, 0], sizes = [1, 1, 8, 1], strides = [1, 1, 1, 1]} : vector<1x2x8x1xf32> to vector<1x1x8x1xf32>
    %59 = vector.shape_cast %58 : vector<1x1x8x1xf32> to vector<1x8x1xf32>
    %60 = vector.broadcast %59 : vector<1x8x1xf32> to vector<1x8x128xf32>
    %61 = arith.mulf %57, %60 : vector<1x8x128xf32>
    %cst_10 = arith.constant 1.000000e+00 : f32
    %62 = vector.broadcast %cst_10 : f32 to vector<1x8x128xf32>
    %63 = arith.subf %62, %61 : vector<1x8x128xf32>
    %64 = vector.extract_strided_slice %54 {offsets = [0, 1, 0, 0], sizes = [1, 1, 8, 128], strides = [1, 1, 1, 1]} : vector<1x2x8x128xf32> to vector<1x1x8x128xf32>
    %65 = vector.shape_cast %64 : vector<1x1x8x128xf32> to vector<1x8x128xf32>
    %66 = vector.extract_strided_slice %55 {offsets = [0, 1, 0, 0], sizes = [1, 1, 8, 1], strides = [1, 1, 1, 1]} : vector<1x2x8x1xf32> to vector<1x1x8x1xf32>
    %67 = vector.shape_cast %66 : vector<1x1x8x1xf32> to vector<1x8x1xf32>
    %68 = vector.broadcast %67 : vector<1x8x1xf32> to vector<1x8x128xf32>
    %69 = arith.mulf %65, %68 : vector<1x8x128xf32>
    %cst_11 = arith.constant 1.000000e+00 : f32
    %70 = vector.broadcast %cst_11 : f32 to vector<1x8x128xf32>
    %71 = arith.subf %70, %69 : vector<1x8x128xf32>
    %72 = arith.mulf %63, %71 : vector<1x8x128xf32>
    %73 = vector.broadcast %53 : vector<1x8x1xf32> to vector<1x8x128xf32>
    %74 = arith.addf %72, %73 : vector<1x8x128xf32>
    %75 = vector.extract_strided_slice %0 {offsets = [14, 0, 0], sizes = [1, 8, 1], strides = [1, 1, 1]} : vector<15x8x1xf32> to vector<1x8x1xf32>
    %76 = vector.extract_strided_slice %1 {offsets = [7, 0, 0], sizes = [1, 8, 1], strides = [1, 1, 1]} : vector<8x8x1xf32> to vector<1x8x1xf32>
    %77 = vector.broadcast %75 : vector<1x8x1xf32> to vector<1x8x128xf32>
    %78 = arith.mulf %74, %77 : vector<1x8x128xf32>
    %cst_12 = arith.constant 1.000000e+00 : f32
    %79 = vector.broadcast %cst_12 : f32 to vector<1x8x128xf32>
    %80 = arith.subf %79, %78 : vector<1x8x128xf32>
    %81 = vector.extract_strided_slice %80 {offsets = [0, 0, 0], sizes = [1, 4, 128], strides = [1, 1, 1]} : vector<1x8x128xf32> to vector<1x4x128xf32>
    %82 = vector.extract_strided_slice %80 {offsets = [0, 4, 0], sizes = [1, 4, 128], strides = [1, 1, 1]} : vector<1x8x128xf32> to vector<1x4x128xf32>
    %83 = arith.mulf %81, %82 : vector<1x4x128xf32>
    %84 = vector.extract_strided_slice %76 {offsets = [0, 0, 0], sizes = [1, 4, 1], strides = [1, 1, 1]} : vector<1x8x1xf32> to vector<1x4x1xf32>
    %85 = vector.broadcast %84 : vector<1x4x1xf32> to vector<1x4x128xf32>
    %86 = arith.addf %83, %85 : vector<1x4x128xf32>
    %87 = vector.shape_cast %86 : vector<1x4x128xf32> to vector<4x128xf32>
    %c0_13 = arith.constant 0 : index
    %88 = arith.index_cast %3 : i32 to index
    %89 = vector.load %arg4[%c0_13, %88] : memref<4x128xf32, #tpu.memory_space<vmem>>, vector<4x128xf32>
    tpu.vector_store %arg4[%c0_13, %88], %87 {strides = array<i32>} : memref<4x128xf32, #tpu.memory_space<vmem>>, vector<4x128xf32>,
    %c1_i32 = arith.constant 1 : i32
    return
  }
  func.func @transform_0(%arg0: i32) -> (i32, i32, i32) {
    %c0_i32 = arith.constant 0 : i32
    %c0_i32_0 = arith.constant 0 : i32
    %c0_i32_1 = arith.constant 0 : i32
    return %c0_i32, %c0_i32_0, %arg0 : i32, i32, i32
  }
  func.func @transform_1(%arg0: i32) -> (i32, i32, i32) {
    %c0_i32 = arith.constant 0 : i32
    %c0_i32_0 = arith.constant 0 : i32
    %c0_i32_1 = arith.constant 0 : i32
    %c0_i32_2 = arith.constant 0 : i32
    return %c0_i32, %c0_i32_0, %c0_i32_1 : i32, i32, i32
  }
  func.func @transform_2(%arg0: i32) -> (i32, i32, i32) {
    %c0_i32 = arith.constant 0 : i32
    %c0_i32_0 = arith.constant 0 : i32
    %c0_i32_1 = arith.constant 0 : i32
    %c0_i32_2 = arith.constant 0 : i32
    return %c0_i32, %c0_i32_0, %c0_i32_1 : i32, i32, i32
  }
  func.func @transform_3(%arg0: i32) -> (i32, i32) {
    %c0_i32 = arith.constant 0 : i32
    %c0_i32_0 = arith.constant 0 : i32
    return %c0_i32, %arg0 : i32, i32
  }
}

</mosaic_0001>

<bundles_post_ra>
// kernel: tile.6
= control target key start
LH: loop header
LB: loop body
LE: loop exit
PB: predicated region body
PF: predicated region fallthrough
CT: control target
= control target key end

     0   :  { %s22_s0 = inlined_call_operand.vmem [shape: f32[4], index: 0, kind: input, shape index: {}]   ;;  %s23_s1 = inlined_call_operand.vmem [shape: f32[2,4], index: 1, kind: output, shape index: {}]  }
   0x1   :  { %v4_v0 = vld [vmem:[%s22_s0] ss:$0 sm:$0xff] }
   0x2   :  { %5 = vst [vmem:[%s23_s1] sm:$0x3] %v4_v0 }

// kernel: recursive_linear_fuzzy_nand.1
= control target key start
LH: loop header
LB: loop body
LE: loop exit
PB: predicated region body
PF: predicated region fallthrough
CT: control target
= control target key end

     0   :  { %v217_v0 = vmov 0   ;;  %s334_s1 = inlined_call_operand.vmem [shape: f32[15,8,1], index: 1, kind: input, shape index: {}]   ;;  %s335_s2 = inlined_call_operand.vmem [shape: f32[8,8,1], index: 2, kind: input, shape index: {}]   ;;  %s336_s0 = inlined_call_operand.vmem [shape: f32[8,8,2], index: 0, kind: input, shape index: {}]   ;;  %s337_s3 = inlined_call_operand.vmem [shape: f32[4,2], index: 3, kind: output, shape index: {}]  }
   0x1   :  { %216 = vset.pattern.permute.xlu1 %v217_v0  ;;  %215 = vset.pattern.permute.xlu0 %v217_v0  ;;  %v18_v1 = vld [vmem:[%s334_s1 + $0x20] sm:$0xff]  ;;  %v20_v3 = vld [vmem:[%s334_s1 + $0x30] sm:$0xff]  ;;  %v17_v5 = vld [vmem:[%s334_s1 + $0x18] sm:$0xff] }
   0x2   :  { %v14_v2 = vld [vmem:[%s334_s1] sm:$0xff]  ;;  %57 = vperm.xlu1 %216, %v18_v1   ;;  %v16_v4 = vld [vmem:[%s334_s1 + $0x10] sm:$0xff]  ;;  %v15_v6 = vld [vmem:[%s334_s1 + $0x8] sm:$0xff] }
   0x3   :  { %47 = vperm.xlu0 %215, %v14_v2   ;;  %v21_v7 = vld [vmem:[%s334_s1 + $0x38] sm:$0xff]  ;;  %v19_v8 = vld [vmem:[%s334_s1 + $0x28] sm:$0xff]  ;;  %v29_v10 = vld [vmem:[%s335_s2] sm:$0xff] }
   0x4   :  { %v30_v9 = vld [vmem:[%s335_s2 + $0x8] sm:$0xff]  ;;  %v32_v11 = vld [vmem:[%s335_s2 + $0x18] sm:$0xff]  ;;  %v31_v12 = vld [vmem:[%s335_s2 + $0x10] sm:$0xff] }
   0x5   :  { %v24_v13 = vld [vmem:[%s334_s1 + $0x50] sm:$0xff]  ;;  %v22_v14 = vld [vmem:[%s334_s1 + $0x40] sm:$0xff]  ;;  %v25_v15 = vld [vmem:[%s334_s1 + $0x58] sm:$0xff] }
   0x6   :  { %62 = vperm.xlu1 %216, %v20_v3   ;;  %v23_v16 = vld [vmem:[%s334_s1 + $0x48] sm:$0xff]  ;;  %v33_v18 = vld [vmem:[%s335_s2 + $0x20] sm:$0xff]  ;;  %v28_v21 = vld [vmem:[%s334_s1 + $0x70] sm:$0xff] }
   0x7   :  { %52 = vperm.xlu0 %215, %v16_v4   ;;  %v34_v17 = vld [vmem:[%s335_s2 + $0x28] sm:$0xff]  ;;  %v26_v20 = vld [vmem:[%s334_s1 + $0x60] sm:$0xff]  ;;  %v35_v22 = vld [vmem:[%s335_s2 + $0x30] sm:$0xff] }
   0x8   :  { %v27_v19 = vld [vmem:[%s334_s1 + $0x68] sm:$0xff]  ;;  %v36_v23 = vld [vmem:[%s335_s2 + $0x38] sm:$0xff]  ;;  %v41_v34 = vld [vmem:[%s336_s0 + $0x20] sm:$0xff] }
   0x9   :  { %v38_v30 = vld [vmem:[%s336_s0 + $0x8] sm:$0xff]  ;;  %v37_v35 = vld [vmem:[%s336_s0] sm:$0xff]  ;;  %v40_v36 = vld [vmem:[%s336_s0 + $0x18] sm:$0xff] }
   0xa   :  { %80 = vperm.xlu1 %216, %v17_v5   ;;  %v42_v33 = vld [vmem:[%s336_s0 + $0x28] sm:$0xff]  ;;  %v44_v37 = vld [vmem:[%s336_s0 + $0x38] sm:$0xff]  ;;  %v43_v40 = vld [vmem:[%s336_s0 + $0x30] sm:$0xff] }
   0xb   :  { %75 = vperm.xlu0 %215, %v15_v6   ;;  %v39_v41 = vld [vmem:[%s336_s0 + $0x10] sm:$0xff] }
   0xe   :  { %90 = vperm.xlu1 %216, %v21_v7  }
   0xf   :  { %85 = vperm.xlu0 %215, %v19_v8  }
  0x12   :  { %112 = vperm.xlu1 %216, %v30_v9  }
  0x13   :  { %107 = vperm.xlu0 %215, %v29_v10  }
  0x16   :  { %122 = vperm.xlu1 %216, %v32_v11  }
  0x17   :  { %117 = vperm.xlu0 %215, %v31_v12  }
  0x1a   :  { %136 = vperm.xlu1 %216, %v24_v13  }
  0x1b   :  { %131 = vperm.xlu0 %215, %v22_v14  }
  0x1e   :  { %150 = vperm.xlu1 %216, %v25_v15  }
  0x1f   :  { %145 = vperm.xlu0 %215, %v23_v16  }
  0x22   :  { %166 = vperm.xlu1 %216, %v34_v17  }
  0x23   :  { %161 = vperm.xlu0 %215, %v33_v18  }
  0x26   :  { %180 = vperm.xlu1 %216, %v27_v19  }
  0x27   :  { %173 = vperm.xlu0 %215, %v26_v20  }
  0x2a   :  { %194 = vperm.xlu1 %216, %v28_v21  }
  0x2b   :  { %188 = vperm.xlu0 %215, %v35_v22  }
  0x2f   :  { %205 = vperm.xlu0 %215, %v36_v23  }
  0x81   :  { %v58_v24 = vpop.permute.xlu1 %57 }
  0x82   :  { %v48_v25 = vpop.permute.xlu0 %47  ;;  %v67_v44 = vmul.f32 %v58_v24, %v41_v34 }
  0x83   :  { %v65_v45 = vmul.f32 %v48_v25, %v37_v35 }
  0x84   :  { %v71_v54 = vsub.f32 1.0, %v67_v44 }
  0x85   :  { %v63_v26 = vpop.permute.xlu1 %62  ;;  %v69_v55 = vsub.f32 1.0, %v65_v45 }
  0x86   :  { %v53_v27 = vpop.permute.xlu0 %52  ;;  %v68_v48 = vmul.f32 %v63_v26, %v43_v40 }
  0x87   :  { %v66_v49 = vmul.f32 %v53_v27, %v39_v41 }
  0x88   :  { %v72_v58 = vsub.f32 1.0, %v68_v48 }
  0x89   :  { %v81_v28 = vpop.permute.xlu1 %80  ;;  %v70_v59 = vsub.f32 1.0, %v66_v49 }
  0x8a   :  { %v76_v29 = vpop.permute.xlu0 %75  ;;  %v94_v46 = vmul.f32 %v81_v28, %v40_v36 }
  0x8b   :  { %v93_v38 = vmul.f32 %v76_v29, %v38_v30 }
  0x8c   :  { %v98_v56 = vsub.f32 1.0, %v94_v46 }
  0x8d   :  { %v91_v31 = vpop.permute.xlu1 %90  ;;  %v97_v50 = vsub.f32 1.0, %v93_v38 }
  0x8e   :  { %v86_v32 = vpop.permute.xlu0 %85  ;;  %v96_v47 = vmul.f32 %v91_v31, %v44_v37  ;;  %v102_v0 = vmul.f32 %v98_v56, %v70_v59 }
  0x8f   :  { %v95_v39 = vmul.f32 %v86_v32, %v42_v33  ;;  %v101_v60 = vmul.f32 %v97_v50, %v69_v55 }
  0x90   :  { %v100_v57 = vsub.f32 1.0, %v96_v47 }
  0x91   :  { %v113_v42 = vpop.permute.xlu1 %112  ;;  %v99_v51 = vsub.f32 1.0, %v95_v39 }
  0x92   :  { %v108_v43 = vpop.permute.xlu0 %107  ;;  %v104_v2 = vmul.f32 %v100_v57, %v72_v58  ;;  %v126_v4 = vadd.f32 %v113_v42, %v102_v0 }
  0x93   :  { %v103_v61 = vmul.f32 %v99_v51, %v71_v54  ;;  %v125_v1 = vadd.f32 %v108_v43, %v101_v60 }
  0x95   :  { %v123_v52 = vpop.permute.xlu1 %122 }
  0x96   :  { %v118_v53 = vpop.permute.xlu0 %117  ;;  %v128_v5 = vadd.f32 %v123_v52, %v104_v2 }
  0x97   :  { %v127_v3 = vadd.f32 %v118_v53, %v103_v61 }
  0x99   :  { %v137_v62 = vpop.permute.xlu1 %136 }
  0x9a   :  { %v132_v63 = vpop.permute.xlu0 %131  ;;  %v140_v6 = vmul.f32 %v137_v62, %v127_v3 }
  0x9b   :  { %v139_v7 = vmul.f32 %v132_v63, %v125_v1 }
  0x9c   :  { %v142_v12 = vsub.f32 1.0, %v140_v6 }
  0x9d   :  { %v151_v8 = vpop.permute.xlu1 %150  ;;  %v141_v13 = vsub.f32 1.0, %v139_v7 }
  0x9e   :  { %v146_v9 = vpop.permute.xlu0 %145  ;;  %v154_v10 = vmul.f32 %v151_v8, %v128_v5 }
  0x9f   :  { %v153_v11 = vmul.f32 %v146_v9, %v126_v4 }
  0xa0   :  { %v156_v14 = vsub.f32 1.0, %v154_v10 }
  0xa1   :  { %v155_v15 = vsub.f32 1.0, %v153_v11  ;;  %v167_v16 = vpop.permute.xlu1 %166 }
  0xa2   :  { %v162_v17 = vpop.permute.xlu0 %161  ;;  %v158_v18 = vmul.f32 %v156_v14, %v142_v12 }
  0xa3   :  { %v157_v19 = vmul.f32 %v155_v15, %v141_v13 }
  0xa4   :  { %v170_v20 = vadd.f32 %v167_v16, %v158_v18 }
  0xa5   :  { %v169_v21 = vadd.f32 %v162_v17, %v157_v19  ;;  %v181_v22 = vpop.permute.xlu1 %180 }
  0xa6   :  { %v174_v23 = vpop.permute.xlu0 %173  ;;  %v183_v24 = vmul.f32 %v181_v22, %v170_v20 }
  0xa7   :  { %v176_v25 = vmul.f32 %v174_v23, %v169_v21 }
  0xa8   :  { %v184_v26 = vsub.f32 1.0, %v183_v24 }
  0xa9   :  { %v177_v27 = vsub.f32 1.0, %v176_v25  ;;  %v195_v31 = vpop.permute.xlu1 %194 }
  0xaa   :  { %v189_v29 = vpop.permute.xlu0 %188 }
  0xab   :  { %v185_v28 = vmul.f32 %v184_v26, %v177_v27 }
  0xad   :  { %v191_v30 = vadd.f32 %v189_v29, %v185_v28 }
  0xae   :  { %v206_v36 = vpop.permute.xlu0 %205 }
  0xaf   :  { %v197_v32 = vmul.f32 %v195_v31, %v191_v30 }
  0xb1   :  { %v198_v33 = vsub.f32 1.0, %v197_v32 }
  0xb3   :  { %v200_v34 = vrot.slane %v198_v33, 4 }
  0xb5   :  { %v202_v35 = vmul.f32 %v200_v34, %v198_v33 }
  0xb7   :  { %v208_v37 = vadd.f32 %v206_v36, %v202_v35 }
  0xb9   :  { %209 = vst [vmem:[%s337_s3] sm:$0xf] %v208_v37 }

</bundles_post_ra>
